<compile_context>
chip_gen: v6e
topology: v6e:2x2x1
jax: 0.10.0
libtpu: 0.0.40
codegen_flags: <defaults>
</compile_context>

<pallas_src>
import functools

import numpy as np
import jax
import jax.numpy as jnp
from jax import lax
from jax.experimental import pallas as pl
from jax.experimental.pallas import tpu as pltpu

INVALID_TOKEN_ID = -1


def _round_up(x, m):
    return ((x + m - 1) // m) * m


# ----------------------------------------------------------------------------
# Kernel: row-wise argmax over vocab (vocab axis tiled, reduction axis last).
# ----------------------------------------------------------------------------
def _argmax_kernel(p_ref, o_ref, vmax_sc, vbase_sc, *,
                   vocab_size, tv, num_vchunks, row_sub):
    k = pl.program_id(1)
    tn = p_ref.shape[0]
    n_groups = tv // 128
    last = num_vchunks - 1
    last_base = last * tv          # static: chunk base column of the tail chunk

    @pl.when(k == 0)
    def _init():
        vmax_sc[...] = jnp.full_like(vmax_sc, -jnp.inf)
        vbase_sc[...] = jnp.zeros_like(vbase_sc)

    def _accumulate(mask_tail):
        # mask_tail=True is only instantiated for the statically-known last vocab
        # chunk: group base columns are compile-time constants there, so groups
        # entirely past the vocab are skipped and only the single partial group
        # pays an iota + compare + select.  Full chunks pay nothing extra.
        for r0 in range(0, tn, row_sub):
            rs = min(row_sub, tn - r0)
            vmax = vmax_sc[r0:r0 + rs, :]        # vreg-resident across groups
            vbase = vbase_sc[r0:r0 + rs, :]
            for g in range(n_groups):
                g0 = g * 128
                if mask_tail:
                    col0 = last_base + g0
                    if col0 >= vocab_size:
                        continue                 # group entirely past the vocab
                sub = p_ref[r0:r0 + rs, g0:g0 + 128].astype(jnp.float32)
                if mask_tail:
                    base_val = jnp.int32(col0)
                    if col0 + 128 > vocab_size:  # partial tail group only
                        lane = lax.broadcasted_iota(jnp.int32, sub.shape, 1)
                        sub = jnp.where(lane < (vocab_size - col0), sub, -jnp.inf)
                else:
                    base_val = k * tv + g0       # scalar splat, no (rs,128) iota
                upd = sub > vmax                 # strict ">" keeps first occurrence
                vbase = jnp.where(upd, base_val, vbase)
                vmax = jnp.where(upd, sub, vmax)
            vmax_sc[r0:r0 + rs, :] = vmax        # spill once per chunk
            vbase_sc[r0:r0 + rs, :] = vbase

    tail_is_partial = (vocab_size % tv) != 0
    if tail_is_partial:
        if num_vchunks > 1:
            @pl.when(k != last)
            def _full_chunks():
                _accumulate(False)

        @pl.when(k == last)
        def _tail_chunk():
            _accumulate(True)
    else:
        _accumulate(False)

    @pl.when(k == last)
    def _finalize():
        m = vmax_sc[...]                                           # (tn, 128)
        col = vbase_sc[...] + lax.broadcasted_iota(jnp.int32, m.shape, 1)
        gmax = jnp.max(m, axis=1, keepdims=True)                   # (tn, 1)
        big = jnp.iinfo(jnp.int32).max
        # Min global index among lanes attaining the max -> first-occurrence argmax.
        o_ref[...] = jnp.min(jnp.where(m == gmax, col, big),
                             axis=1, keepdims=True)


def vocab_argmax(target_probs, tn=None, tv=None, row_sub=None):
    """target_probs: (N, V) float -> (N,) int32 argmax along vocab."""
    N, V = target_probs.shape
    if tn is None:
        # >=2 row blocks when N allows it (megacore), multiple of 8, capped at 256.
        tn = min(256, _round_up(max(pl.cdiv(N, 2), 1), 8))
    if tv is None:
        # ~4 MiB f32 input blocks; can be raised (e.g. 8192 on v7x) now that the
        # accumulator scratch is only (tn, 128).
        tv = min(4096, _round_up(V, 128))
    if row_sub is None:
        row_sub = min(tn, 64)    # bounds vreg residency of the running max/arg pair
    assert tn % 8 == 0 and tv % 128 == 0 and row_sub % 8 == 0

    num_vchunks = pl.cdiv(V, tv)
    kernel = functools.partial(_argmax_kernel, vocab_size=V, tv=tv,
                               num_vchunks=num_vchunks, row_sub=row_sub)

    block_bytes = tn * tv * target_probs.dtype.itemsize
    vmem_limit = min(48 * 1024 * 1024,
                     max(32 * 1024 * 1024,
                         3 * block_bytes + 2 * tn * 128 * 4 + (1 << 20)))

    out = pl.pallas_call(
        kernel,
        out_shape=jax.ShapeDtypeStruct((N, 1), jnp.int32),
        grid_spec=pltpu.PrefetchScalarGridSpec(
            num_scalar_prefetch=0,
            grid=(pl.cdiv(N, tn), num_vchunks),
            in_specs=[pl.BlockSpec((tn, tv), lambda i, k: (i, k))],
            out_specs=pl.BlockSpec((tn, 1), lambda i, k: (i, 0)),
            scratch_shapes=[pltpu.VMEM((tn, 128), jnp.float32),
                            pltpu.VMEM((tn, 128), jnp.int32)]),
        compiler_params=pltpu.CompilerParams(
            dimension_semantics=("parallel", "arbitrary"),
            vmem_limit_bytes=vmem_limit),
    )(target_probs)
    return out[:, 0]


# ----------------------------------------------------------------------------
# Device-side path: single jit dispatch.  The ragged gather and the rejection /
# bonus epilogue are plain jnp (they fuse with each other next to the Pallas
# call); `lens` is a runtime array so raggedness changes never retrace.
# ----------------------------------------------------------------------------
@jax.jit
def _rejection_core(target_probs, draft_ext, lens):
    """target_probs (N, V); draft_ext (B, Lp1) i32, INVALID padded (col L = pad);
    lens (B,) i32 with lens[b] = len(draft[b]) + 1.  Returns (B, Lp1) i32."""
    B, Lp1 = draft_ext.shape

    flat_ids = vocab_argmax(target_probs)                          # (N,) int32

    starts = jnp.concatenate(
        [jnp.zeros((1,), jnp.int32), jnp.cumsum(lens)[:-1].astype(jnp.int32)])
    col = jnp.arange(Lp1, dtype=jnp.int32)[None, :]                # (1, Lp1)
    valid = col < lens[:, None]                                    # (B, Lp1)
    pos = jnp.where(valid, starts[:, None] + col, 0)
    out_ids = jnp.where(valid, jnp.take(flat_ids, pos, axis=0),
                        INVALID_TOKEN_ID).astype(jnp.int32)        # (B, Lp1)

    # "bad" = draft mismatch or invalid/padded output position.  The reference's
    # bonus fix-up makes the first rejected position accepted, so
    # final generate_mask[t] = (t <= first_bad).
    bad = (out_ids != draft_ext) | (out_ids == INVALID_TOKEN_ID)
    first_bad = jnp.min(jnp.where(bad, col, Lp1), axis=1, keepdims=True)
    return jnp.where(col <= first_bad, out_ids, INVALID_TOKEN_ID)


# ----------------------------------------------------------------------------
# Wrapper: RejectionSampler.forward_native (all_greedy=True)
# ----------------------------------------------------------------------------
def rejection_sample_greedy(draft_token_ids, target_probs):
    """
    draft_token_ids: python list[list[int]] (ragged, host-side metadata)
    target_probs:    jnp.ndarray (sum(len(x)+1 for x), vocab) float
    returns:         jnp.ndarray (batch, max_spec_len+1) int32, INVALID padded
    """
    sample_lens = [len(x) + 1 for x in draft_token_ids]
    B = len(sample_lens)
    L = max(len(x) for x in draft_token_ids)
    Lp1 = L + 1
    N = sum(sample_lens)
    assert target_probs.shape[0] == N

    draft_ext = np.full((B, Lp1), INVALID_TOKEN_ID, dtype=np.int32)
    for b, row in enumerate(draft_token_ids):
        if len(row):
            draft_ext[b, :len(row)] = np.asarray(row, dtype=np.int32)
    lens = np.asarray(sample_lens, dtype=np.int32)

    # TODO(synk): serving callers should bucket (B, Lp1) and pad target_probs rows
    # to fixed shapes so this jit never recompiles across decode steps.
    return _rejection_core(target_probs, jnp.asarray(draft_ext), jnp.asarray(lens))


# ----------------------------------------------------------------------------
# Numpy reference mirroring forward_native, for verification.
# ----------------------------------------------------------------------------
def _reference(draft_token_ids, target_probs_np):
    sample_lens = [len(x) + 1 for x in draft_token_ids]
    B = len(sample_lens)
    L = max(len(x) for x in draft_token_ids)
    Lp1 = L + 1
    flat = target_probs_np.argmax(-1)
    out = np.full((B, Lp1), INVALID_TOKEN_ID, dtype=np.int64)
    off = 0
    for b, sl in enumerate(sample_lens):
        out[b, :sl] = flat[off:off + sl]
        off += sl
    draft_pad = np.full((B, L), INVALID_TOKEN_ID, dtype=np.int64)
    for b, row in enumerate(draft_token_ids):
        draft_pad[b, :len(row)] = row
    accept = np.cumprod((out[:, :L] == draft_pad).astype(np.int64), axis=1)
    gen = np.concatenate([accept, np.zeros((B, 1), np.int64)], 1).astype(bool) & \
          (out != INVALID_TOKEN_ID)
    zeros_mask = gen == 0
    first_zero = zeros_mask.argmax(1)
    rows_with_zero = zeros_mask.any(1)
    gen[rows_with_zero, first_zero[rows_with_zero]] = True
    return np.where(gen, out, INVALID_TOKEN_ID)


# ----------------------------------------------------------------------------
# Self-tests
# ----------------------------------------------------------------------------
def _argmax_selftest(key):
    # Small explicit tiles: multi vocab chunks, partial tail group, multiple row
    # blocks and row sub-tiles (incl. a partial row block).
    N, V = 40, 1000
    probs = jax.random.uniform(key, (N, V), dtype=jnp.float32)
    got = np.asarray(jax.block_until_ready(
        vocab_argmax(probs, tn=16, tv=256, row_sub=8)))
    ref = np.asarray(probs).argmax(-1).astype(np.int32)
    assert np.array_equal(got, ref), f"argmax mismatch:\n{got}\nvs\n{ref}"


def _run_case(key, draft_token_ids, vocab):
    sample_lens = [len(x) + 1 for x in draft_token_ids]
    N = sum(sample_lens)
    logits = jax.random.uniform(key, (N, vocab), dtype=jnp.float32)
    target_probs = jax.nn.softmax(logits, axis=-1)
    tp_np = np.asarray(target_probs)
    greedy = tp_np.argmax(-1)

    # Force varying-length accepted prefixes so acceptance / bonus paths trigger.
    starts = np.concatenate([[0], np.cumsum(sample_lens)[:-1]])
    for b, row in enumerate(draft_token_ids):
        for t in range(min(len(row), b + 1)):
            row[t] = int(greedy[starts[b] + t])

    result = jax.block_until_ready(
        rejection_sample_greedy(draft_token_ids, target_probs))
    ref = _reference(draft_token_ids, tp_np)
    assert np.array_equal(np.asarray(result), ref.astype(np.int32)), \
        f"mismatch:\n{np.asarray(result)}\nvs\n{ref}"


if __name__ == "__main__":
    key = jax.random.PRNGKey(0)
    k1, k2, k3 = jax.random.split(key, 3)

    # Kernel-only check exercising the multi-chunk (unmasked) + tail-masked paths.
    _argmax_selftest(k3)

    # Case 1: small ragged batch, vocab NOT a multiple of 128 (partial tail group).
    _run_case(k1, [[1, 2, 3], [7], [4, 5]], vocab=333)

    # Case 2: larger ragged batch incl. fully-accepted rows (bonus-token path).
    _run_case(k2, [[1, 2, 3], [9], [5, 6, 7, 8], [11, 12], [13, 14, 15]],
              vocab=2200)

    print("KERNEL_OK")
</pallas_src>

<mosaic_0001>
module attributes {stable_mosaic.version = 11 : i64} {
  func.func @_argmax_kernel(%arg0: i32, %arg1: i32, %arg2: memref<16x256xf32, #tpu.memory_space<vmem>>, %arg3: memref<16x1xi32, #tpu.memory_space<vmem>>, %arg4: memref<16x128xf32, #tpu.memory_space<vmem>>, %arg5: memref<16x128xi32, #tpu.memory_space<vmem>>) attributes {dimension_semantics = [#tpu.dimension_semantics<parallel>, #tpu.dimension_semantics<arbitrary>], iteration_bounds = array<i64: 3, 4>, scalar_prefetch = 0 : i64, scratch_operands = 2 : i64, tpu.core_type = #tpu.core_type<tc>, window_params = [{transform_indices = @transform_0, window_bounds = array<i64: 16, 256>}, {transform_indices = @transform_1, window_bounds = array<i64: 16, 1>}]} {
    %c0_i32 = arith.constant 0 : i32
    %0 = arith.cmpi eq, %arg1, %c0_i32 : i32
    %1 = arith.extui %0 : i1 to i32
    %c0_i32_0 = arith.constant 0 : i32
    %2 = arith.cmpi ne, %1, %c0_i32_0 : i32
    scf.if %2 {
      %cst = arith.constant 0xFF800000 : f32
      %12 = vector.broadcast %cst : f32 to vector<16x128xf32>
      %c0 = arith.constant 0 : index
      %c0_6 = arith.constant 0 : index
      %13 = vector.load %arg4[%c0, %c0_6] : memref<16x128xf32, #tpu.memory_space<vmem>>, vector<16x128xf32>
      tpu.vector_store %arg4[%c0, %c0_6], %12 {strides = array<i32>} : memref<16x128xf32, #tpu.memory_space<vmem>>, vector<16x128xf32>,
      %c0_i32_7 = arith.constant 0 : i32
      %14 = vector.broadcast %c0_i32_7 : i32 to vector<16x128xi32>
      %c0_8 = arith.constant 0 : index
      %c0_9 = arith.constant 0 : index
      %15 = vector.load %arg5[%c0_8, %c0_9] : memref<16x128xi32, #tpu.memory_space<vmem>>, vector<16x128xi32>
      tpu.vector_store %arg5[%c0_8, %c0_9], %14 {strides = array<i32>} : memref<16x128xi32, #tpu.memory_space<vmem>>, vector<16x128xi32>,
    } else {
    }
    %c3_i32 = arith.constant 3 : i32
    %3 = arith.cmpi ne, %arg1, %c3_i32 : i32
    %4 = arith.extui %3 : i1 to i32
    %c0_i32_1 = arith.constant 0 : i32
    %5 = arith.cmpi ne, %4, %c0_i32_1 : i32
    scf.if %5 {
      %c0 = arith.constant 0 : index
      %c0_6 = arith.constant 0 : index
      %12 = vector.load %arg4[%c0, %c0_6] : memref<16x128xf32, #tpu.memory_space<vmem>>, vector<8x128xf32>
      %c0_7 = arith.constant 0 : index
      %c0_8 = arith.constant 0 : index
      %13 = vector.load %arg5[%c0_7, %c0_8] : memref<16x128xi32, #tpu.memory_space<vmem>>, vector<8x128xi32>
      %c0_9 = arith.constant 0 : index
      %c0_10 = arith.constant 0 : index
      %14 = vector.load %arg2[%c0_9, %c0_10] : memref<16x256xf32, #tpu.memory_space<vmem>>, vector<8x128xf32>
      %c256_i32 = arith.constant 256 : i32
      %15 = arith.muli %arg1, %c256_i32 : i32
      %c0_i32_11 = arith.constant 0 : i32
      %16 = arith.addi %15, %c0_i32_11 : i32
      %17 = arith.cmpf ogt, %14, %12 : vector<8x128xf32>
      %18 = vector.broadcast %16 : i32 to vector<8x128xi32>
      %19 = arith.select %17, %18, %13 : vector<8x128xi1>, vector<8x128xi32>
      %20 = arith.select %17, %14, %12 : vector<8x128xi1>, vector<8x128xf32>
      %c0_12 = arith.constant 0 : index
      %c128 = arith.constant 128 : index
      %21 = vector.load %arg2[%c0_12, %c128] : memref<16x256xf32, #tpu.memory_space<vmem>>, vector<8x128xf32>
      %c256_i32_13 = arith.constant 256 : i32
      %22 = arith.muli %arg1, %c256_i32_13 : i32
      %c128_i32 = arith.constant 128 : i32
      %23 = arith.addi %22, %c128_i32 : i32
      %24 = arith.cmpf ogt, %21, %20 : vector<8x128xf32>
      %25 = vector.broadcast %23 : i32 to vector<8x128xi32>
      %26 = arith.select %24, %25, %19 : vector<8x128xi1>, vector<8x128xi32>
      %27 = arith.select %24, %21, %20 : vector<8x128xi1>, vector<8x128xf32>
      %c0_14 = arith.constant 0 : index
      %c0_15 = arith.constant 0 : index
      %28 = vector.load %arg4[%c0_14, %c0_15] : memref<16x128xf32, #tpu.memory_space<vmem>>, vector<8x128xf32>
      tpu.vector_store %arg4[%c0_14, %c0_15], %27 {strides = array<i32>} : memref<16x128xf32, #tpu.memory_space<vmem>>, vector<8x128xf32>,
      %c0_16 = arith.constant 0 : index
      %c0_17 = arith.constant 0 : index
      %29 = vector.load %arg5[%c0_16, %c0_17] : memref<16x128xi32, #tpu.memory_space<vmem>>, vector<8x128xi32>
      tpu.vector_store %arg5[%c0_16, %c0_17], %26 {strides = array<i32>} : memref<16x128xi32, #tpu.memory_space<vmem>>, vector<8x128xi32>,
      %c8 = arith.constant 8 : index
      %c0_18 = arith.constant 0 : index
      %30 = vector.load %arg4[%c8, %c0_18] : memref<16x128xf32, #tpu.memory_space<vmem>>, vector<8x128xf32>
      %c8_19 = arith.constant 8 : index
      %c0_20 = arith.constant 0 : index
      %31 = vector.load %arg5[%c8_19, %c0_20] : memref<16x128xi32, #tpu.memory_space<vmem>>, vector<8x128xi32>
      %c8_21 = arith.constant 8 : index
      %c0_22 = arith.constant 0 : index
      %32 = vector.load %arg2[%c8_21, %c0_22] : memref<16x256xf32, #tpu.memory_space<vmem>>, vector<8x128xf32>
      %c256_i32_23 = arith.constant 256 : i32
      %33 = arith.muli %arg1, %c256_i32_23 : i32
      %c0_i32_24 = arith.constant 0 : i32
      %34 = arith.addi %33, %c0_i32_24 : i32
      %35 = arith.cmpf ogt, %32, %30 : vector<8x128xf32>
      %36 = vector.broadcast %34 : i32 to vector<8x128xi32>
      %37 = arith.select %35, %36, %31 : vector<8x128xi1>, vector<8x128xi32>
      %38 = arith.select %35, %32, %30 : vector<8x128xi1>, vector<8x128xf32>
      %c8_25 = arith.constant 8 : index
      %c128_26 = arith.constant 128 : index
      %39 = vector.load %arg2[%c8_25, %c128_26] : memref<16x256xf32, #tpu.memory_space<vmem>>, vector<8x128xf32>
      %c256_i32_27 = arith.constant 256 : i32
      %40 = arith.muli %arg1, %c256_i32_27 : i32
      %c128_i32_28 = arith.constant 128 : i32
      %41 = arith.addi %40, %c128_i32_28 : i32
      %42 = arith.cmpf ogt, %39, %38 : vector<8x128xf32>
      %43 = vector.broadcast %41 : i32 to vector<8x128xi32>
      %44 = arith.select %42, %43, %37 : vector<8x128xi1>, vector<8x128xi32>
      %45 = arith.select %42, %39, %38 : vector<8x128xi1>, vector<8x128xf32>
      %c8_29 = arith.constant 8 : index
      %c0_30 = arith.constant 0 : index
      %46 = vector.load %arg4[%c8_29, %c0_30] : memref<16x128xf32, #tpu.memory_space<vmem>>, vector<8x128xf32>
      tpu.vector_store %arg4[%c8_29, %c0_30], %45 {strides = array<i32>} : memref<16x128xf32, #tpu.memory_space<vmem>>, vector<8x128xf32>,
      %c8_31 = arith.constant 8 : index
      %c0_32 = arith.constant 0 : index
      %47 = vector.load %arg5[%c8_31, %c0_32] : memref<16x128xi32, #tpu.memory_space<vmem>>, vector<8x128xi32>
      tpu.vector_store %arg5[%c8_31, %c0_32], %44 {strides = array<i32>} : memref<16x128xi32, #tpu.memory_space<vmem>>, vector<8x128xi32>,
    } else {
    }
    %c3_i32_2 = arith.constant 3 : i32
    %6 = arith.cmpi eq, %arg1, %c3_i32_2 : i32
    %7 = arith.extui %6 : i1 to i32
    %c0_i32_3 = arith.constant 0 : i32
    %8 = arith.cmpi ne, %7, %c0_i32_3 : i32
    scf.if %8 {
      %c0 = arith.constant 0 : index
      %c0_6 = arith.constant 0 : index
      %12 = vector.load %arg4[%c0, %c0_6] : memref<16x128xf32, #tpu.memory_space<vmem>>, vector<8x128xf32>
      %c0_7 = arith.constant 0 : index
      %c0_8 = arith.constant 0 : index
      %13 = vector.load %arg5[%c0_7, %c0_8] : memref<16x128xi32, #tpu.memory_space<vmem>>, vector<8x128xi32>
      %c0_9 = arith.constant 0 : index
      %c0_10 = arith.constant 0 : index
      %14 = vector.load %arg2[%c0_9, %c0_10] : memref<16x256xf32, #tpu.memory_space<vmem>>, vector<8x128xf32>
      %15 = arith.cmpf ogt, %14, %12 : vector<8x128xf32>
      %c768_i32 = arith.constant 768 : i32
      %16 = vector.broadcast %c768_i32 : i32 to vector<8x128xi32>
      %17 = arith.select %15, %16, %13 : vector<8x128xi1>, vector<8x128xi32>
      %18 = arith.select %15, %14, %12 : vector<8x128xi1>, vector<8x128xf32>
      %c0_11 = arith.constant 0 : index
      %c128 = arith.constant 128 : index
      %19 = vector.load %arg2[%c0_11, %c128] : memref<16x256xf32, #tpu.memory_space<vmem>>, vector<8x128xf32>
      %20 = tpu.iota {dimensions = array<i32: 1>} : vector<8x128xi32>
      %c104_i32 = arith.constant 104 : i32
      %21 = vector.broadcast %c104_i32 : i32 to vector<8x128xi32>
      %22 = arith.cmpi slt, %20, %21 : vector<8x128xi32>
      %cst = arith.constant 0xFF800000 : f32
      %23 = vector.broadcast %cst : f32 to vector<8x128xf32>
      %24 = arith.select %22, %19, %23 : vector<8x128xi1>, vector<8x128xf32>
      %25 = arith.cmpf ogt, %24, %18 : vector<8x128xf32>
      %c896_i32 = arith.constant 896 : i32
      %26 = vector.broadcast %c896_i32 : i32 to vector<8x128xi32>
      %27 = arith.select %25, %26, %17 : vector<8x128xi1>, vector<8x128xi32>
      %28 = arith.select %25, %24, %18 : vector<8x128xi1>, vector<8x128xf32>
      %c0_12 = arith.constant 0 : index
      %c0_13 = arith.constant 0 : index
      %29 = vector.load %arg4[%c0_12, %c0_13] : memref<16x128xf32, #tpu.memory_space<vmem>>, vector<8x128xf32>
      tpu.vector_store %arg4[%c0_12, %c0_13], %28 {strides = array<i32>} : memref<16x128xf32, #tpu.memory_space<vmem>>, vector<8x128xf32>,
      %c0_14 = arith.constant 0 : index
      %c0_15 = arith.constant 0 : index
      %30 = vector.load %arg5[%c0_14, %c0_15] : memref<16x128xi32, #tpu.memory_space<vmem>>, vector<8x128xi32>
      tpu.vector_store %arg5[%c0_14, %c0_15], %27 {strides = array<i32>} : memref<16x128xi32, #tpu.memory_space<vmem>>, vector<8x128xi32>,
      %c8 = arith.constant 8 : index
      %c0_16 = arith.constant 0 : index
      %31 = vector.load %arg4[%c8, %c0_16] : memref<16x128xf32, #tpu.memory_space<vmem>>, vector<8x128xf32>
      %c8_17 = arith.constant 8 : index
      %c0_18 = arith.constant 0 : index
      %32 = vector.load %arg5[%c8_17, %c0_18] : memref<16x128xi32, #tpu.memory_space<vmem>>, vector<8x128xi32>
      %c8_19 = arith.constant 8 : index
      %c0_20 = arith.constant 0 : index
      %33 = vector.load %arg2[%c8_19, %c0_20] : memref<16x256xf32, #tpu.memory_space<vmem>>, vector<8x128xf32>
      %34 = arith.cmpf ogt, %33, %31 : vector<8x128xf32>
      %c768_i32_21 = arith.constant 768 : i32
      %35 = vector.broadcast %c768_i32_21 : i32 to vector<8x128xi32>
      %36 = arith.select %34, %35, %32 : vector<8x128xi1>, vector<8x128xi32>
      %37 = arith.select %34, %33, %31 : vector<8x128xi1>, vector<8x128xf32>
      %c8_22 = arith.constant 8 : index
      %c128_23 = arith.constant 128 : index
      %38 = vector.load %arg2[%c8_22, %c128_23] : memref<16x256xf32, #tpu.memory_space<vmem>>, vector<8x128xf32>
      %39 = tpu.iota {dimensions = array<i32: 1>} : vector<8x128xi32>
      %c104_i32_24 = arith.constant 104 : i32
      %40 = vector.broadcast %c104_i32_24 : i32 to vector<8x128xi32>
      %41 = arith.cmpi slt, %39, %40 : vector<8x128xi32>
      %cst_25 = arith.constant 0xFF800000 : f32
      %42 = vector.broadcast %cst_25 : f32 to vector<8x128xf32>
      %43 = arith.select %41, %38, %42 : vector<8x128xi1>, vector<8x128xf32>
      %44 = arith.cmpf ogt, %43, %37 : vector<8x128xf32>
      %c896_i32_26 = arith.constant 896 : i32
      %45 = vector.broadcast %c896_i32_26 : i32 to vector<8x128xi32>
      %46 = arith.select %44, %45, %36 : vector<8x128xi1>, vector<8x128xi32>
      %47 = arith.select %44, %43, %37 : vector<8x128xi1>, vector<8x128xf32>
      %c8_27 = arith.constant 8 : index
      %c0_28 = arith.constant 0 : index
      %48 = vector.load %arg4[%c8_27, %c0_28] : memref<16x128xf32, #tpu.memory_space<vmem>>, vector<8x128xf32>
      tpu.vector_store %arg4[%c8_27, %c0_28], %47 {strides = array<i32>} : memref<16x128xf32, #tpu.memory_space<vmem>>, vector<8x128xf32>,
      %c8_29 = arith.constant 8 : index
      %c0_30 = arith.constant 0 : index
      %49 = vector.load %arg5[%c8_29, %c0_30] : memref<16x128xi32, #tpu.memory_space<vmem>>, vector<8x128xi32>
      tpu.vector_store %arg5[%c8_29, %c0_30], %46 {strides = array<i32>} : memref<16x128xi32, #tpu.memory_space<vmem>>, vector<8x128xi32>,
    } else {
    }
    %c3_i32_4 = arith.constant 3 : i32
    %9 = arith.cmpi eq, %arg1, %c3_i32_4 : i32
    %10 = arith.extui %9 : i1 to i32
    %c0_i32_5 = arith.constant 0 : i32
    %11 = arith.cmpi ne, %10, %c0_i32_5 : i32
    scf.if %11 {
      %c0 = arith.constant 0 : index
      %c0_6 = arith.constant 0 : index
      %12 = vector.load %arg4[%c0, %c0_6] : memref<16x128xf32, #tpu.memory_space<vmem>>, vector<16x128xf32>
      %c0_7 = arith.constant 0 : index
      %c0_8 = arith.constant 0 : index
      %13 = vector.load %arg5[%c0_7, %c0_8] : memref<16x128xi32, #tpu.memory_space<vmem>>, vector<16x128xi32>
      %14 = tpu.iota {dimensions = array<i32: 1>} : vector<16x128xi32>
      %15 = arith.addi %13, %14 : vector<16x128xi32>
      %cst = arith.constant dense<0xFF800000> : vector<16xf32>
      %16 = vector.multi_reduction <maximumf>, %12, %cst [1] : vector<16x128xf32> to vector<16xf32>
      %17 = vector.shape_cast %16 : vector<16xf32> to vector<16x1xf32>
      %18 = vector.broadcast %17 : vector<16x1xf32> to vector<16x128xf32>
      %19 = arith.cmpf oeq, %12, %18 : vector<16x128xf32>
      %c2147483647_i32 = arith.constant 2147483647 : i32
      %20 = vector.broadcast %c2147483647_i32 : i32 to vector<16x128xi32>
      %21 = arith.select %19, %15, %20 : vector<16x128xi1>, vector<16x128xi32>
      %cst_9 = arith.constant dense<2147483647> : vector<16xi32>
      %22 = vector.multi_reduction <minsi>, %21, %cst_9 [1] : vector<16x128xi32> to vector<16xi32>
      %23 = vector.shape_cast %22 : vector<16xi32> to vector<16x1xi32>
      %c0_10 = arith.constant 0 : index
      %c0_11 = arith.constant 0 : index
      %24 = vector.load %arg3[%c0_10, %c0_11] : memref<16x1xi32, #tpu.memory_space<vmem>>, vector<16x1xi32>
      tpu.vector_store %arg3[%c0_10, %c0_11], %23 {strides = array<i32>} : memref<16x1xi32, #tpu.memory_space<vmem>>, vector<16x1xi32>,
    } else {
    }
    return
  }
  func.func @transform_0(%arg0: i32, %arg1: i32) -> (i32, i32) {
    %c0_i32 = arith.constant 0 : i32
    return %arg0, %arg1 : i32, i32
  }
  func.func @transform_1(%arg0: i32, %arg1: i32) -> (i32, i32) {
    %c0_i32 = arith.constant 0 : i32
    %c0_i32_0 = arith.constant 0 : i32
    return %arg0, %c0_i32 : i32, i32
  }
}

</mosaic_0001>

<bundles_post_ra>
// kernel: tpu_custom_call.1
= control target key start
LH: loop header
LB: loop body
LE: loop exit
PB: predicated region body
PF: predicated region fallthrough
CT: control target
= control target key end

     0   :  { %6 = vsyncpa [#allocation5], 0  ;;  %s1127_s0 = inlined_call_operand.hbm [shape: f32[40,1000], index: 0, kind: input, shape index: {}]   ;;  %s1128_s1 = inlined_call_operand.vmem [shape: s32[40,1], index: 1, kind: output, shape index: {}]  }
   0x1   :  { %8 = vsyncpa [#allocation5 + $0x1], 0  ;;  %s913_s6 = smov 0   ;;  %s915_s7 = smov 0  }
   0x2   :  { %s917_s8 = smov 0   ;;  %s919_s9 = smov 0  }
   0x3   :  { %s921_s10 = smov 0   ;;  %s923_s11 = smov 0  }
   0x4   :  { %s925_s12 = smov 0   ;;  %s927_s13 = smov 0  }
   0x5   :  { %s929_s14 = smov 0   ;;  %s931_s15 = smov 0  }
   0x6 LB: > { %s530_s16 = sadd.s32 4294967295, %s863_s15   ;;  %s23_s17 = sadd.s32 1, %s855_s13  ;;  %s863_s15 = sphi %s931_s15, %s14_s15   ;;  %s859_s14 = sphi %s929_s14, %s1140_s14   ;;  %s855_s13 = sphi %s927_s13, %s1139_s13   ;;  %s851_s12 = sphi %s925_s12, %s1138_s12   ;;  %s847_s11 = sphi %s923_s11, %s1137_s11   ;;  %s843_s10 = sphi %s921_s10, %s1136_s10   ;;  %s839_s9 = sphi %s919_s9, %s1135_s9   ;;  %s835_s8 = sphi %s917_s8, %s1134_s8   ;;  %s831_s7 = sphi %s915_s7, %s1133_s7   ;;  %s827_s6 = sphi %s913_s6, %s1132_s6  }
   0x7   : > { %p24_p0 = scmp.ge.s32.totalorder %s23_s17, 4  ;;  %s26_s18 = sadd.s32 1, %s859_s14 }
   0x8   : > { %s35_s19 = sadd.s32 1, %s843_s10  ;;  %p42_p1 = scmp.ne.s32.totalorder %s843_s10, %s839_s9 }
   0x9   : > { %s1142_s17 = smov (%p24_p0, %s23_s17), 0  ;;  %s1144_s18 = smov (!%p24_p0, %s26_s18), %s859_s14 }
   0xa   : > { %s31_s20 = ssub.s32 %s855_s13, %s1142_s17  ;;  %p43_p2 = scmp.eq.s32.totalorder %s863_s15, 0 }
   0xb   : > { %p28_p3 = scmp.ge.s32.totalorder %s1144_s18, 3  ;;  %p48_p4 = scmp.ne.s32.totalorder %s839_s9, %s835_s8 }
   0xc   : > { %p974_p5 = por %p43_p2, %p42_p1  ;;  %p49_p6 = scmp.eq.s32.totalorder %s530_s16, 0 }
   0xd   : > { %s1146_s18 = smov (%p28_p3, %s1144_s18), 0  ;;  %s61_s23 = sadd.s32 1, %s831_s7 }
   0xe   : > { %p980_p7 = por %p49_p6, %p48_p4  ;;  %s30_s24 = ssub.s32 %s859_s14, %s1146_s18 }
   0xf   : > { %p71_p8 = scmp.ne.s32.totalorder %s831_s7, %s827_s6  ;;  %s32_s25 = sor.u32 %s31_s20, %s30_s24 }
  0x10   : > { %p59_p9 = scmp.eq.s32.totalorder %s30_s24, 0  ;;  %p33_p10 = scmp.eq.s32.totalorder %s32_s25, 0 }
  0x11   : > { %p72_p11 = scmp.eq.s32.totalorder %s530_s16, 11  ;;  %p533_p13 = scmp.ge.s32.totalorder %s863_s15, 12 }
  0x12   : > { %s990_s26 = scalar_select %p59_p9, %s831_s7, %s61_s23  }
  0x13   : > { %s993_s27 = scalar_select %p33_p10, %s843_s10, %s35_s19  }
  0x14   : > { %p995_p12 = por %p72_p11, %p71_p8  ;;  %94 = sbr.rel (%p533_p13) target bundleno = 60 (0x3c), region = 16 }
  0x19   : > { %97 = sbr.rel (!%p974_p5) target bundleno = 60 (0x3c), region = 20  ;;  %s98_s29 = sand.u32 (%p974_p5), 1, %s843_s10  }
  0x1a   : > { %s535_s30 = sshll.u32 (%p974_p5), %s859_s14, 1  ;;  %s534_s2 = sshll.u32 (%p974_p5), %s98_s29, 5 }
  0x1b   : > { %s536_s3 = sshll.u32 (%p974_p5), %s855_s13, 1  ;;  %s105_s4 = ssub.s32 (%p974_p5), 5, %s535_s30 }
  0x1c   : > { %p106_p0 = scmp.lt.s32.totalorder (%p974_p5), %s105_s4, 2  ;;  %s1008_s16 = scalar_lea.sflag (%p974_p5), [#allocation5], %s98_s29 }
  0x1d   : > { %s102_s19 = scalar_lea.vmem (%p974_p5), [#allocation4], %s534_s2 }
  0x1e   : > { %s1148_s4 = smov (!%p106_p0, %s105_s4), 2 }
  0x1f   : > { %s1005_s5 = sshll.u32 %s1148_s4, 8 }
  0x20   : > { %s111_s8 = ssub.s32 512, %s1005_s5 }
  0x21   : > { %112 = vsyncadd %s1008_s16, %s111_s8  ;;  %p539_p1 = scmp.ne.s32.totalorder %s1005_s5, 0  ;;  %s569_s20 = sshll.u32 %s859_s14, 4 }
  0x22   : > { %s115_s21 = sadd.s32 %s569_s20, %s536_s3  ;;  %s119_s23 = sshll.u32 %s102_s19, 4  ;;  %s1013_s23 = int_to_ptr.vmem [resolvable:$true] %s119_s23 }
  0x23   : > { %s541_s24 = sshll.u32 %s115_s21, 7  ;;  %s727_s3 = scalar_lea.hbm %s1127_s0, 5120 }
  0x24   : > { %s1018_s4 = scalar_lea.hbm %s1127_s0, %s541_s24 }
  0x25   : > { %s723_s29 = scalar_lea.hbm %s1018_s4, %s1005_s5 }
  0x26   : > { %p724_p2 = scmp.ne.s32.totalorder %s1018_s4, %s723_s29  ;;  %p729_p5 = scmp.lt.s32.totalorder %s727_s3, %s723_s29 }
  0x28   : > { %p725_p3 = pnand %p724_p2, %p539_p1 }
  0x2a   : > { %p726_p4 = pneg %p725_p3 }
  0x2c   : > { %p731_p6 = pnand %p729_p5, %p726_p4 }
  0x2e   : > { %734 = shalt.err (!%p731_p6)
}
  0x2f   : > { %s735_s19 = scalar_lea.vmem %s1013_s23, %s1005_s5  ;;  %s897_s20 = smov [#allocation4]  }
  0x30   : > { %p736_p8 = scmp.ne.s32.totalorder %s1013_s23, %s735_s19  ;;  %s739_s21 = sshll.u32 %s897_s20, 4  ;;  %s740_s21 = int_to_ptr.vmem [resolvable:$false] %s739_s21 }
  0x31   : > { %s741_s24 = scalar_lea.vmem %s740_s21, 1024  ;;  %p742_p11 = scmp.lt.s32.totalorder %s1013_s23, %s740_s21 }
  0x32   : > { %p737_p9 = pnand %p736_p8, %p539_p1  ;;  %p743_p13 = scmp.lt.s32.totalorder %s741_s24, %s735_s19 }
  0x34   : > { %p738_p10 = pneg %p737_p9  ;;  %p744_p0 = por %p743_p13, %p742_p11 }
  0x36   : > { %p745_p2 = pnand %p744_p0, %p738_p10 }
  0x38   : > { %748 = shalt.err (!%p745_p2)
}
  0x39   : > { %s898_s25 = smov 1024   ;;  %s899_s30 = smov 256  }
  0x3a   : > { %s900_s29 = smov 16  }
  0x3b   : > { %125 = dma.hbm_to_vmem [thread:$0]  (%p539_p1), %s1018_s4, %s1005_s5, %s1013_s23, %s1008_s16, %s898_s25, %s899_s30, %s900_s29  }
  0x3c PF: > { %p544_p3 = scmp.ge.s32.totalorder %s863_s15, 1  ;;  %p127_p4 = scmp.lt.s32.totalorder %s863_s15, 13 }
  0x3e   : > { %p128_p5 = pnand %p544_p3, %p127_p4 }
  0x3f   : > { %s133_s2 = sand.u32 (!%p128_p5), 1, %s839_s9  }
  0x40   : > { %131 = sbr.rel (%p128_p5) target bundleno = 585 (0x249), region = 24  ;;  %s545_s8 = sshll.u32 (!%p128_p5), %s133_s2, 5 }
  0x41   : > { %s134_s3 = scalar_lea.sflag (!%p128_p5), [#allocation5], %s133_s2  ;;  %s1043_s19 = scalar_lea.vmem (!%p128_p5), [#allocation4], %s545_s8 }
  0x45   : > { %822 = dma.done.wait (%p980_p7), %s134_s3, 512  }
  0x46   : > { %824 = vsyncadd (%p980_p7), %s134_s3, 4294966784  ;;  %s152_s5 = sand.u32 1, %s827_s6   ;;  %p547_p1 = scmp.ne.s32.totalorder %s847_s11, 0 }
  0x47   : > { %s546_s16 = sshll.u32 %s152_s5, 4 }
  0x48   : > { %s1050_s23 = scalar_lea.vmem [#allocation6], %s546_s16   ;;  %170 = sbr.rel (%p547_p1) target bundleno = 80 (0x50), region = 32 }
  0x4d   : > { %v901_v0 = vmov -inf   ;;  %v902_v1 = vmov 0  }
  0x4e   : > { %171 = vst [vmem:[#allocation2] sm:$0xff] %v901_v0  ;;  %172 = vst [vmem:[#allocation2 + $0x8] sm:$0xff] %v901_v0 }
  0x4f   : > { %173 = vst [vmem:[#allocation3 + $0x8] sm:$0xff] %v902_v1  ;;  %174 = vst [vmem:[#allocation3] sm:$0xff] %v902_v1 }
  0x50 PF: > { %p548_p6 = scmp.eq.s32.totalorder %s847_s11, 3 }
  0x51   : > { %s549_s6 = sshll.u32 (!%p548_p6), %s847_s11, 8 }
  0x52   : > { %178 = sbr.rel (%p548_p6) target bundleno = 95 (0x5f), region = 36  ;;  %s188_s22 = sadd.s32 (!%p548_p6), 128, %s549_s6 }
  0x57   : > { %v179_v2 = vld [vmem:[#allocation2] sm:$0xff]  ;;  %v187_v4 = vld [vmem:[%s1043_s19 + $0x8] sm:$0xff]  ;;  %v180_v5 = vld [vmem:[#allocation3 + $0x8] sm:$0xff]  ;;  %v184_v6 = vstv %s549_s6  ;;  %v190_v11 = vstv %s188_s22 }
  0x58   : > { %v181_v3 = vld [vmem:[%s1043_s19] sm:$0xff]  ;;  %v195_v7 = vld [vmem:[#allocation2 + $0x8] sm:$0xff]  ;;  %v197_v8 = vld [vmem:[%s1043_s19 + $0x10] sm:$0xff] }
  0x59   : > { %vm183_vm0 = vcmp.gt.f32.partialorder %v181_v3, %v179_v2  ;;  %vm198_vm1 = vcmp.gt.f32.partialorder %v197_v8, %v195_v7  ;;  %v201_v12 = vld [vmem:[%s1043_s19 + $0x18] sm:$0xff]  ;;  %v196_v13 = vld [vmem:[#allocation3] sm:$0xff] }
  0x5a   : > { %v186_v9 = vsel %vm183_vm0, %v181_v3, %v179_v2  ;;  %v185_v10 = vsel %vm183_vm0, %v184_v6, %v180_v5  ;;  %v200_v14 = vsel %vm198_vm1, %v197_v8, %v195_v7  ;;  %v199_v15 = vsel %vm198_vm1, %v184_v6, %v196_v13 }
  0x5b   : > { %vm189_vm2 = vcmp.gt.f32.partialorder %v187_v4, %v186_v9  ;;  %vm202_vm3 = vcmp.gt.f32.partialorder %v201_v12, %v200_v14 }
  0x5c   : > { %v192_v16 = vsel %vm189_vm2, %v187_v4, %v186_v9  ;;  %v191_v17 = vsel %vm189_vm2, %v190_v11, %v185_v10  ;;  %v204_v18 = vsel %vm202_vm3, %v201_v12, %v200_v14  ;;  %v203_v19 = vsel %vm202_vm3, %v190_v11, %v199_v15 }
  0x5d   : > { %193 = vst [vmem:[#allocation2] sm:$0xff] %v192_v16  ;;  %194 = vst [vmem:[#allocation3 + $0x8] sm:$0xff] %v191_v17 }
  0x5e   : > { %205 = vst [vmem:[#allocation2 + $0x8] sm:$0xff] %v204_v18  ;;  %206 = vst [vmem:[#allocation3] sm:$0xff] %v203_v19 }
  0x5f PF: > { %p550_p7 = scmp.ne.s32.totalorder %s847_s11, 3 }
  0x61   : > { %210 = sbr.rel (%p550_p7) target bundleno = 541 (0x21d), region = 40 }
  0x66   : > { %v211_v20 = vld [vmem:[#allocation2] sm:$0xff]  ;;  %v218_v22 = vlaneseq  ;;  %v212_v23 = vld [vmem:[#allocation3 + $0x8] sm:$0xff]  ;;  %v227_v24 = vld [vmem:[#allocation2 + $0x8] sm:$0xff]  ;;  %vm282_vm13 = vcmask 7168  }
  0x67   : > { %v213_v21 = vld [vmem:[%s1043_s19] sm:$0xff]  ;;  %v228_v25 = vld [vmem:[#allocation3] sm:$0xff]  ;;  %v217_v26 = vld [vmem:[%s1043_s19 + $0x8] sm:$0xff] }
  0x68   : > { %vm214_vm4 = vcmp.gt.f32.partialorder %v213_v21, %v211_v20  ;;  %v219_v27 = vand.u32 127, %v218_v22  ;;  %v229_v28 = vld [vmem:[%s1043_s19 + $0x10] sm:$0xff]  ;;  %v233_v29 = vld [vmem:[%s1043_s19 + $0x18] sm:$0xff] }
  0x69   : > { %v216_v30 = vsel %vm214_vm4, %v213_v21, %v211_v20  ;;  %vm230_vm5 = vcmp.gt.f32.partialorder %v229_v28, %v227_v24  ;;  %v215_v31 = vsel %vm214_vm4, 768, %v212_v23 }
  0x6a   : > { %vm220_vm6 = vcmp.lt.s32.totalorder %v219_v27, 104  ;;  %v231_v32 = vsel %vm230_vm5, 768, %v228_v25  ;;  %v232_v33 = vsel %vm230_vm5, %v229_v28, %v227_v24 }
  0x6b   : > { %v221_v34 = vsel %vm220_vm6, %v217_v26, -inf  ;;  %v234_v35 = vsel %vm220_vm6, %v233_v29, -inf }
  0x6c   : > { %vm222_vm7 = vcmp.gt.f32.partialorder %v221_v34, %v216_v30  ;;  %vm235_vm8 = vcmp.gt.f32.partialorder %v234_v35, %v232_v33 }
  0x6d   : > { %v224_v36 = vsel %vm222_vm7, %v221_v34, %v216_v30  ;;  %v223_v37 = vsel %vm222_vm7, 896, %v215_v31  ;;  %v236_v38 = vsel %vm235_vm8, 896, %v231_v32  ;;  %v237_v39 = vsel %vm235_vm8, %v234_v35, %v232_v33 }
  0x6e   : > { %225 = vst [vmem:[#allocation2] sm:$0xff] %v224_v36  ;;  %246 = vmax.xlane.f32.xlu0 %v224_v36  ;;  %226 = vst [vmem:[#allocation3 + $0x8] sm:$0xff] %v223_v37  ;;  %v244_v40 = vadd.s32 %v223_v37, %v219_v27  ;;  %v245_v41 = vadd.s32 %v236_v38, %v219_v27 }
  0x6f   : > { %238 = vst [vmem:[#allocation2 + $0x8] sm:$0xff] %v237_v39  ;;  %239 = vst [vmem:[#allocation3] sm:$0xff] %v236_v38 }
  0x72   : > { %248 = vmax.xlane.f32.xlu0 %v237_v39 }
  0xf7   : > { %v247_v42 = vpop.xlane.xlu0 %246 }
  0xf8   : > { %vm250_vm9 = vcmp.eq.f32.partialorder %v224_v36, %v247_v42 }
  0xf9   : > { %v252_v43 = vsel %vm250_vm9, %v244_v40, 2147483647 }
  0xfa   : > { %v255_v44 = vshra.s32 %v252_v43, 16  ;;  %v254_v50 = vand.u32 65535, %v252_v43 }
  0xfb   : > { %v249_v45 = vpop.xlane.xlu0 %248 }
  0xfc   : > { %vm251_vm10 = vcmp.eq.f32.partialorder %v237_v39, %v249_v45  ;;  %v257_v46 = vcvt.s32.f32 %v255_v44  ;;  %v256_v53 = vcvt.s32.f32 %v254_v50 }
  0xfd   : > { %v253_v47 = vsel %vm251_vm10, %v245_v41, 2147483647 }
  0xfe   : > { %258 = vmin.xlane.f32.xlu1 %v257_v46  ;;  %v269_v48 = vshra.s32 %v253_v47, 16  ;;  %v268_v51 = vand.u32 65535, %v253_v47 }
 0x100   : > { %v271_v49 = vcvt.s32.f32 %v269_v48  ;;  %v270_v56 = vcvt.s32.f32 %v268_v51 }
 0x102   : > { %272 = vmin.xlane.f32.xlu1 %v271_v49 }
 0x187   : > { %v259_v52 = vpop.xlane.xlu1 %258 }
 0x188   : > { %vm260_vm11 = vcmp.eq.f32.partialorder %v257_v46, %v259_v52  ;;  %v265_v58 = vcvt.f32.s32 %v259_v52 }
 0x189   : > { %v261_v54 = vsel %vm260_vm11, %v256_v53, inf }
 0x18a   : > { %262 = vmin.xlane.f32.xlu0 %v261_v54  ;;  %v266_v60 = vshll.u32 %v265_v58, 16 }
 0x18b   : > { %v273_v55 = vpop.xlane.xlu1 %272 }
 0x18c   : > { %vm274_vm12 = vcmp.eq.f32.partialorder %v271_v49, %v273_v55  ;;  %v279_v61 = vcvt.f32.s32 %v273_v55 }
 0x18d   : > { %v275_v57 = vsel %vm274_vm12, %v270_v56, inf }
 0x18e   : > { %276 = vmin.xlane.f32.xlu1 %v275_v57  ;;  %v280_v1 = vshll.u32 %v279_v61, 16 }
 0x213   : > { %v263_v59 = vpop.xlane.xlu0 %262 }
 0x214   : > { %v264_v62 = vcvt.f32.s32 %v263_v59 }
 0x216   : > { %v267_v63 = vadd.s32 %v266_v60, %v264_v62 }
 0x217   : > { %v277_v0 = vpop.xlane.xlu1 %276 }
 0x218   : > { %283 = vst.msk [vmem:[%s1050_s23] sm:$0xff] %vm282_vm13, %v267_v63  ;;  %v278_v2 = vcvt.f32.s32 %v277_v0 }
 0x21a   : > { %v281_v3 = vadd.s32 %v280_v1, %v278_v2 }
 0x21c   : > { %284 = vst.msk [vmem:[%s1050_s23 + $0x8] sm:$0xff] %vm282_vm13, %v281_v3 }
 0x21d PF: > { %291 = sbr.rel (!%p995_p12) target bundleno = 585 (0x249), region = 44  ;;  %s552_s11 = sshll.u32 (%p995_p12), %s851_s12, 1 }
 0x21e   : > { %s570_s4 = sshll.u32 (%p995_p12), %s851_s12, 4  ;;  %s293_s20 = ssub.s32 (%p995_p12), 5, %s552_s11 }
 0x21f   : > { %s1073_s25 = scalar_lea.vmem (%p995_p12), %s1128_s1, %s570_s4   ;;  %p294_p8 = scmp.lt.s32.totalorder (%p995_p12), %s293_s20, 2 }
 0x222   : > { %s1150_s20 = smov (!%p294_p8, %s293_s20), 2 }
 0x223   : > { %s553_s30 = sshll.u32 %s1150_s20, 7 }
 0x224   : > { %p556_p9 = scmp.eq.s32.totalorder %s553_s30, 0 }
 0x225   : > { %s1079_s28 = sshrl.u32 (!%p556_p9), %s1150_s20, 1 }
 0x226   : > { %302 = sbr.rel (%p556_p9) target bundleno = 585 (0x249), region = 48  ;;  %p557_p12 = scmp.le.s32.totalorder (!%p556_p9), %s1079_s28, 0 }
 0x22b   : > { %472 = sbr.rel (%p557_p12) target bundleno = 568 (0x238), region = 130  ;;  %s865_s12 = smov (!%p557_p12), %s1073_s25  }
 0x22c   : > { %s869_s29 = smov (!%p557_p12), %s1050_s23   ;;  %s873_s2 = smov (!%p557_p12), 0  }
 0x22d   : > { %s877_s8 = smov (!%p557_p12), 0  }
 0x230 LB: >> { %v367_v4 = vld [vmem:[%s871_s29] sm:$0xff]  ;;  %v369_v5 = vld [vmem:[%s871_s29 + $0x8] sm:$0xff]  ;;  %s371_s3 = sadd.s32 1, %s875_s2  ;;  %s361_s8 = sadd.s32 1, %s879_s8   ;;  %s879_s8 = sphi %s877_s8, %s361_s8   ;;  %s875_s2 = sphi %s873_s2, %s874_s2   ;;  %s871_s29 = sphi %s869_s29, %s376_s29   ;;  %s867_s12 = sphi %s865_s12, %s377_s12  }
 0x231   : >> { %368 = vst [vmem:[%s867_s12] sm:$0xff] %v367_v4  ;;  %370 = vst [vmem:[%s867_s12 + $0x8] sm:$0xff] %v369_v5  ;;  %p372_p10 = scmp.ge.s32.totalorder %s371_s3, %s1079_s28  ;;  %p360_p11 = scmp.ge.s32.totalorder %s361_s8, %s1079_s28 }
 0x233   : >> { %s1152_s3 = smov (%p372_p10, %s371_s3), 0  ;;  %363 = sbr.rel (!%p360_p11) target bundleno = 560 (0x230), region = 136 }
 0x234   : >> { %s558_s19 = sshll.u32 %s1152_s3, 4  ;;  %s874_s2 = smov %s1152_s3  }
 0x235   : >> { %s376_s29 = scalar_lea.vmem %s1050_s23, %s558_s19 [#allocation6]   ;;  %s377_s12 = scalar_lea.vmem %s1073_s25, %s558_s19  }
 0x238 PF: > { %s1089_s5 = sand.u32 1, %s1150_s20   ;;  %s571_s16 = sshll.u32 %s1079_s28, 4 }
 0x239   : > { %s382_s6 = scalar_lea.vmem %s1050_s23, %s571_s16 [#allocation6]   ;;  %s384_s22 = scalar_lea.vmem %s1073_s25, %s571_s16  }
 0x23a   : > { %p563_p13 = scmp.le.s32.totalorder %s1089_s5, 0 }
 0x23b   : > { %s881_s11 = smov (!%p563_p13), %s384_s22   ;;  %s885_s4 = smov (!%p563_p13), %s382_s6  }
 0x23c   : > { %486 = sbr.rel (%p563_p13) target bundleno = 585 (0x249), region = 141  ;;  %s889_s21 = smov (!%p563_p13), 0  }
 0x23d   : > { %s893_s24 = smov (!%p563_p13), 0  }
 0x241 LB: >> { %v394_v6 = vld [vmem:[%s887_s4] sm:$0xff]  ;;  %s396_s20 = sadd.s32 1, %s891_s21  ;;  %s388_s24 = sadd.s32 1, %s895_s24   ;;  %s895_s24 = sphi %s893_s24, %s388_s24   ;;  %s891_s21 = sphi %s889_s21, %s890_s21   ;;  %s887_s4 = sphi %s885_s4, %s401_s4   ;;  %s883_s11 = sphi %s881_s11, %s402_s11  }
 0x242   : >> { %395 = vst [vmem:[%s883_s11] sm:$0xff] %v394_v6  ;;  %p397_p0 = scmp.ge.s32.totalorder %s396_s20, %s1089_s5  ;;  %p387_p2 = scmp.ge.s32.totalorder %s388_s24, %s1089_s5 }
 0x244   : >> { %s1154_s20 = smov (%p397_p0, %s396_s20), 0  ;;  %390 = sbr.rel (!%p387_p2) target bundleno = 577 (0x241), region = 147 }
 0x245   : >> { %s564_s23 = sshll.u32 %s1154_s20, 3  ;;  %s890_s21 = smov %s1154_s20  }
 0x246   : >> { %s401_s4 = scalar_lea.vmem %s382_s6, %s564_s23 [#allocation6]   ;;  %s402_s11 = scalar_lea.vmem %s384_s22, %s564_s23  }
 0x249 PF: > { %s14_s15 = sadd.s32 1, %s863_s15   ;;  %s1132_s6 = smov %s831_s7 }
 0x24a   : > { %p11_p3 = scmp.ge.s32.totalorder %s14_s15, 14   ;;  %s1133_s7 = smov %s990_s26 }
 0x24b   : > { %s1134_s8 = smov %s839_s9  ;;  %s1135_s9 = smov %s843_s10 }
 0x24c   : > { %s1136_s10 = smov %s993_s27  ;;  %s1137_s11 = smov %s855_s13 }
 0x24d   : > { %s1138_s12 = smov %s859_s14  ;;  %s1139_s13 = smov %s1142_s17 }
 0x24e   : > { %s1140_s14 = smov %s1146_s18  ;;  %13 = sbr.rel (!%p11_p3) target bundleno = 6 (0x6), region = 158 }
 0x253   :  { %418 = vsyncpa [#allocation5], 1 }
 0x254   :  { %420 = vsyncpa [#allocation5 + $0x1], 1 }

</bundles_post_ra>
